<compile_context>
chip_gen: v5e
topology: v5e:2x2
jax: 0.10.0
libtpu: 0.0.40
codegen_flags: <defaults>
</compile_context>

<pallas_src>
import math

import jax
import jax.numpy as jnp
import numpy as np
from jax.experimental import pallas as pl
from jax.experimental.pallas import tpu as pltpu


def _layer_norm(x, gamma, beta, eps=1e-5):
    mu = jnp.mean(x, axis=-1, keepdims=True)
    var = jnp.mean((x - mu) ** 2, axis=-1, keepdims=True)
    return (x - mu) * jax.lax.rsqrt(var + eps) * gamma + beta


def make_kernel(kmers, L, mxu_dtype, eps=1e-5):
    kmers = tuple(kmers)
    pads = tuple((k - 1) // 2 for k in kmers)
    louts = tuple(L + 2 * p - k + 1 for k, p in zip(kmers, pads))
    MP = max(pads)

    def kernel(*refs):
        it = iter(refs)
        gb_ref = next(it)                       # (2,) f32 SMEM: [mean(g), mean(b)]
        x1_ref = next(it)                       # (TB, d_emb)   mxu dtype
        xp_ref = next(it)                       # (TB, Lp, D)   mxu dtype
        conv_w = [next(it) for _ in kmers]      # (k, D, D)     mxu dtype
        conv_b = [next(it) for _ in kmers]      # (1, D)        f32
        gamma_ref = next(it)                    # (1, D)        f32
        w1_x1_ref = next(it)                    # (d_emb, H1)   mxu dtype
        w1_k = [next(it) for _ in kmers]        # (L_out_k, H1) mxu dtype
        b1_ref, g1_ref, be1_ref = next(it), next(it), next(it)
        W2_ref, b2_ref, g2_ref, be2_ref = next(it), next(it), next(it), next(it)
        Wc_ref, bc_ref = next(it), next(it)
        out_ref = next(it)                      # (TB, n_class) f32
        mid_ref = next(it)                      # (TB, H2)      f32

        f32 = jnp.float32
        xp = xp_ref[...]                        # (TB, Lp, D)
        gamma = gamma_ref[...]                  # (1, D) f32
        g_bar = gb_ref[0]                       # scalar f32 (hoisted mean(gamma))
        b_bar = gb_ref[1]                       # scalar f32 (hoisted mean(beta))

        # decoder layer-1 accumulation (replaces the lane-concat of h):
        z1 = jnp.dot(x1_ref[...], w1_x1_ref[...],
                     preferred_element_type=f32) + b1_ref[...]        # (TB, H1)

        for idx, (k, p, L_out) in enumerate(zip(kmers, pads, louts)):
            s0 = MP - p
            # k accumulated K=D matmuls (no in-kernel lane concat; D need not
            # be a 128-multiple).  At production D % 128 == 0 prefer the
            # single im2col K=k*D matmul for MXU occupancy (see review).
            y = conv_b[idx][...].astype(f32)                          # (1, D)
            for j in range(k):
                y = y + jax.lax.dot_general(
                    xp[:, s0 + j:s0 + j + L_out, :], conv_w[idx][j],
                    (((2,), (0,)), ((), ())),
                    preferred_element_type=f32)                       # (TB,L_out,D)

            # fused LayerNorm(D) -> mean over D, all in f32:
            #   mean_D(LN(y)) = (mean(y*g) - mu*mean(g))*rsqrt(var+eps) + mean(b)
            mu = jnp.mean(y, axis=-1)                                 # (TB, L_out)
            msq = jnp.mean(y * y, axis=-1)
            var = msq - mu * mu
            yg = jnp.mean(y * gamma, axis=-1)
            piece = (yg - mu * g_bar) * jax.lax.rsqrt(var + eps) + b_bar

            # decoder layer-1 partial matmul for this k-mer's slice of W1:
            z1 = z1 + jnp.dot(piece.astype(mxu_dtype), w1_k[idx][...],
                              preferred_element_type=f32)

        # --- LinearDecoder (dropout = identity in eval mode), f32 LN math ---
        h1 = _layer_norm(jnp.tanh(z1), g1_ref[...], be1_ref[...], eps)
        z2 = jnp.dot(h1.astype(mxu_dtype), W2_ref[...],
                     preferred_element_type=f32) + b2_ref[...]
        z2 = jnp.where(z2 >= 0, z2, 0.2 * z2)                         # LeakyReLU(0.2)
        h2 = _layer_norm(z2, g2_ref[...], be2_ref[...], eps)
        logits = jnp.dot(h2.astype(mxu_dtype), Wc_ref[...],
                         preferred_element_type=f32) + bc_ref[...]

        out_ref[...] = logits
        mid_ref[...] = h2

    return kernel, MP, louts


def my_model_forward(x1, tokens, params, *, kmers, L, D, d_emb, dff, n_class,
                     use_bf16=True, batch_tile=None,
                     vmem_limit_bytes=64 * 1024 * 1024):
    kmers = tuple(kmers)
    B = x1.shape[0]
    mxu_dtype = jnp.bfloat16 if use_bf16 else jnp.float32
    kernel, MP, louts = make_kernel(kmers, L, mxu_dtype)
    total_L = sum(louts)
    assert d_emb + total_L == dff, "dim_feedforward must equal total conv length"
    Lp = L + 2 * MP
    H1, H2 = dff // 2, dff // 4

    # --- batch tiling --------------------------------------------------------
    # TB must be a multiple of 8 or equal the (padded) batch (sublane rule).
    # Production guidance (review): TB ~ 64 on v5e/v6e (128 MiB VMEM),
    # TB ~ 32 on v7x (64 MiB VMEM; keep the xp double-buffer <= ~half of VMEM,
    # bf16 xp helps), and keep B_pad/TB >= 2 so both v7x TCs get work.
    if batch_tile is None:
        batch_tile = B if B <= 8 else 8
    TB = int(batch_tile)
    B_pad = ((B + TB - 1) // TB) * TB

    # --- wrapper glue: embedding gather, batch-indexed PE add (faithful to the
    #     reference's pe[:batch_size] quirk), zero padding, dtype prep. -------
    x = params['emb'][tokens] + params['pe'][:B][:, None, :]       # (B, L, D) f32
    xp = jnp.pad(x, ((0, 0), (MP, MP), (0, 0)))                    # (B, Lp, D)
    x1f = x1.astype(jnp.float32)
    if B_pad != B:
        xp = jnp.pad(xp, ((0, B_pad - B), (0, 0), (0, 0)))
        x1f = jnp.pad(x1f, ((0, B_pad - B), (0, 0)))
    xp = xp.astype(mxu_dtype)          # bf16 stream halves HBM bytes + VMEM buf
    x1f = x1f.astype(mxu_dtype)

    # g_bar / b_bar hoisted out of the kernel (constant cross-lane reductions).
    gb = jnp.stack([jnp.mean(params['ln_g']),
                    jnp.mean(params['ln_b'])]).astype(jnp.float32)   # (2,)

    # Row-split of W1 replaces the in-kernel decoder-input lane concat.
    W1 = params['W1'].astype(mxu_dtype)
    w1_parts = [W1[:d_emb]]
    off = d_emb
    for L_out in louts:
        w1_parts.append(W1[off:off + L_out])
        off += L_out

    def wspec(arr):   # full-array weight block, constant block index
        nd = arr.ndim
        return pl.BlockSpec(tuple(arr.shape), lambda b, nd=nd: (0,) * nd)

    inputs = [gb, x1f, xp]
    in_specs = [
        pl.BlockSpec(memory_space=pltpu.MemorySpace.SMEM),   # g_bar/b_bar scalars
        pl.BlockSpec((TB, d_emb), lambda b: (b, 0)),
        pl.BlockSpec((TB, Lp, D), lambda b: (b, 0, 0)),
    ]
    for k in kmers:
        wk = params[f'conv{k}_w'].astype(mxu_dtype)          # (k, D, D)
        inputs.append(wk); in_specs.append(wspec(wk))
    for k in kmers:
        bk = params[f'conv{k}_b']                            # (1, D) f32
        inputs.append(bk); in_specs.append(wspec(bk))
    inputs.append(params['ln_g']); in_specs.append(wspec(params['ln_g']))
    for part in w1_parts:
        inputs.append(part); in_specs.append(wspec(part))
    for name in ['b1', 'g1', 'be1']:
        inputs.append(params[name]); in_specs.append(wspec(params[name]))
    W2 = params['W2'].astype(mxu_dtype)
    inputs.append(W2); in_specs.append(wspec(W2))
    for name in ['b2', 'g2', 'be2']:
        inputs.append(params[name]); in_specs.append(wspec(params[name]))
    Wc = params['Wc'].astype(mxu_dtype)
    inputs.append(Wc); in_specs.append(wspec(Wc))
    inputs.append(params['bc']); in_specs.append(wspec(params['bc']))

    out_shape = (jax.ShapeDtypeStruct((B_pad, n_class), jnp.float32),
                 jax.ShapeDtypeStruct((B_pad, H2), jnp.float32))
    out_specs = (pl.BlockSpec((TB, n_class), lambda b: (b, 0)),
                 pl.BlockSpec((TB, H2), lambda b: (b, 0)))

    fn = pl.pallas_call(
        kernel,
        grid=(B_pad // TB,),                      # batch-tiled grid
        in_specs=in_specs,
        out_specs=out_specs,
        out_shape=out_shape,
        compiler_params=pltpu.CompilerParams(
            dimension_semantics=("parallel",),    # megacore sharding on v7x
            vmem_limit_bytes=vmem_limit_bytes),
    )
    logits, mid = fn(*inputs)
    return logits[:B], mid[:B]


def init_params(key, *, vocab_size, D, kmers, d_emb, dff, n_class, max_len=2000):
    keys = iter(jax.random.split(key, 32))
    p = {}
    p['emb'] = jax.random.normal(next(keys), (vocab_size, D), jnp.float32) * 0.1

    # sinusoidal positional-encoding table, same construction as PyTorch code
    position = jnp.arange(max_len, dtype=jnp.float32)[:, None]
    div_term = jnp.exp(jnp.arange(0, D, 2, dtype=jnp.float32)
                       * (-math.log(10000.0) / D))
    ang = position * div_term
    pe = jnp.zeros((max_len, D), jnp.float32)
    pe = pe.at[:, 0::2].set(jnp.sin(ang))
    pe = pe.at[:, 1::2].set(jnp.cos(ang))
    p['pe'] = pe

    for k in kmers:
        p[f'conv{k}_w'] = jax.random.normal(next(keys), (k, D, D),
                                            jnp.float32) / math.sqrt(D * k)
        p[f'conv{k}_b'] = jax.random.normal(next(keys), (1, D), jnp.float32) * 0.02
    p['ln_g'] = jnp.ones((1, D), jnp.float32)
    p['ln_b'] = jnp.zeros((1, D), jnp.float32)

    H1, H2 = dff // 2, dff // 4
    p['W1'] = jax.random.normal(next(keys), (dff, H1), jnp.float32) / math.sqrt(dff)
    p['b1'] = jax.random.normal(next(keys), (1, H1), jnp.float32) * 0.02
    p['g1'] = jnp.ones((1, H1), jnp.float32)
    p['be1'] = jnp.zeros((1, H1), jnp.float32)
    p['W2'] = jax.random.normal(next(keys), (H1, H2), jnp.float32) / math.sqrt(H1)
    p['b2'] = jax.random.normal(next(keys), (1, H2), jnp.float32) * 0.02
    p['g2'] = jnp.ones((1, H2), jnp.float32)
    p['be2'] = jnp.zeros((1, H2), jnp.float32)
    p['Wc'] = jax.random.normal(next(keys), (H2, n_class), jnp.float32) / math.sqrt(H2)
    p['bc'] = jax.random.normal(next(keys), (1, n_class), jnp.float32) * 0.02
    return p


def reference_forward(x1, tokens, params, *, kmers, L, D):
    """Pure-JAX replica of the PyTorch forward (eval mode) for checking."""
    B = x1.shape[0]
    x = params['emb'][tokens] + params['pe'][:B][:, None, :]
    chunks = []
    for k in kmers:
        p_ = (k - 1) // 2
        L_out = L + 2 * p_ - k + 1
        xp = jnp.pad(x, ((0, 0), (p_, p_), (0, 0)))
        out = jnp.zeros((B, L_out, D), jnp.float32) + params[f'conv{k}_b']
        for j in range(k):
            out = out + jnp.einsum('bld,de->ble', xp[:, j:j + L_out, :],
                                   params[f'conv{k}_w'][j])
        chunks.append(out)
    cat = jnp.concatenate(chunks, axis=1)
    y = _layer_norm(cat, params['ln_g'], params['ln_b'])
    x2 = jnp.mean(y, axis=-1)
    h = jnp.concatenate([x1.astype(jnp.float32), x2], axis=1)
    h1 = _layer_norm(jnp.tanh(h @ params['W1'] + params['b1']),
                     params['g1'], params['be1'])
    z2 = h1 @ params['W2'] + params['b2']
    z2 = jnp.where(z2 >= 0, z2, 0.2 * z2)
    h2 = _layer_norm(z2, params['g2'], params['be2'])
    logits = h2 @ params['Wc'] + params['bc']
    return logits, h2


if __name__ == "__main__":
    # small shapes consistent with the module
    B, L, D = 2, 8, 32          # batch, sequence length, d_model
    d_emb = 8                   # d_embedding -> x1 feature width
    kmers = (3, 5)              # odd k-mers keep per-conv output length == L
    dim_feedforward = sum(L + 2 * ((k - 1) // 2) - k + 1 for k in kmers)  # 16
    dff = d_emb + dim_feedforward                                          # 24
    n_class = 3
    vocab_size = 10

    key = jax.random.PRNGKey(0)
    kp, kx1, ktok = jax.random.split(key, 3)
    params = init_params(kp, vocab_size=vocab_size, D=D, kmers=kmers,
                         d_emb=d_emb, dff=dff, n_class=n_class)
    x1 = jax.random.normal(kx1, (B, d_emb), jnp.float32)
    tokens = jax.random.randint(ktok, (B, L), 0, vocab_size, dtype=jnp.int32)

    ref_logits, ref_mid = reference_forward(x1, tokens, params,
                                            kmers=kmers, L=L, D=D)
    jax.block_until_ready((ref_logits, ref_mid))

    # 1) f32 MXU-operand path (structural/exactness check; tolerance covers
    #    TPU default-matmul-precision differences between XLA and Mosaic).
    lg32, md32 = my_model_forward(x1, tokens, params, kmers=kmers, L=L, D=D,
                                  d_emb=d_emb, dff=dff, n_class=n_class,
                                  use_bf16=False)
    jax.block_until_ready((lg32, md32))
    assert np.allclose(np.asarray(lg32), np.asarray(ref_logits),
                       atol=5e-2, rtol=5e-2), "f32 logits mismatch"
    assert np.allclose(np.asarray(md32), np.asarray(ref_mid),
                       atol=5e-2, rtol=5e-2), "f32 x_mid mismatch"

    # 2) production bf16 MXU-operand path (f32 accumulate / f32 LN math).
    lgbf, mdbf = my_model_forward(x1, tokens, params, kmers=kmers, L=L, D=D,
                                  d_emb=d_emb, dff=dff, n_class=n_class,
                                  use_bf16=True)
    jax.block_until_ready((lgbf, mdbf))
    assert np.allclose(np.asarray(lgbf), np.asarray(ref_logits),
                       atol=1.5e-1, rtol=1.5e-1), "bf16 logits mismatch"
    assert np.allclose(np.asarray(mdbf), np.asarray(ref_mid),
                       atol=1.5e-1, rtol=1.5e-1), "bf16 x_mid mismatch"

    print("KERNEL_OK")
</pallas_src>

<mosaic_0001>
module attributes {stable_mosaic.version = 11 : i64} {
  func.func @kernel(%arg0: i32, %arg1: memref<2xf32, #tpu.memory_space<smem>>, %arg2: memref<2x8xf32, #tpu.memory_space<vmem>>, %arg3: memref<2x12x32xf32, #tpu.memory_space<vmem>>, %arg4: memref<3x32x32xf32, #tpu.memory_space<vmem>>, %arg5: memref<5x32x32xf32, #tpu.memory_space<vmem>>, %arg6: memref<1x32xf32, #tpu.memory_space<vmem>>, %arg7: memref<1x32xf32, #tpu.memory_space<vmem>>, %arg8: memref<1x32xf32, #tpu.memory_space<vmem>>, %arg9: memref<8x12xf32, #tpu.memory_space<vmem>>, %arg10: memref<8x12xf32, #tpu.memory_space<vmem>>, %arg11: memref<8x12xf32, #tpu.memory_space<vmem>>, %arg12: memref<1x12xf32, #tpu.memory_space<vmem>>, %arg13: memref<1x12xf32, #tpu.memory_space<vmem>>, %arg14: memref<1x12xf32, #tpu.memory_space<vmem>>, %arg15: memref<12x6xf32, #tpu.memory_space<vmem>>, %arg16: memref<1x6xf32, #tpu.memory_space<vmem>>, %arg17: memref<1x6xf32, #tpu.memory_space<vmem>>, %arg18: memref<1x6xf32, #tpu.memory_space<vmem>>, %arg19: memref<6x3xf32, #tpu.memory_space<vmem>>, %arg20: memref<1x3xf32, #tpu.memory_space<vmem>>, %arg21: memref<2x3xf32, #tpu.memory_space<vmem>>, %arg22: memref<2x6xf32, #tpu.memory_space<vmem>>) attributes {dimension_semantics = [#tpu.dimension_semantics<parallel>], iteration_bounds = array<i64: 1>, scalar_prefetch = 0 : i64, scratch_operands = 0 : i64, tpu.core_type = #tpu.core_type<tc>, window_params = [{transform_indices = @transform_0, window_bounds = array<i64: 2>}, {transform_indices = @transform_1, window_bounds = array<i64: 2, 8>}, {transform_indices = @transform_2, window_bounds = array<i64: 2, 12, 32>}, {pipeline_mode = #tpu.pipeline_mode<synchronous>, transform_indices = @transform_3, window_bounds = array<i64: 3, 32, 32>}, {pipeline_mode = #tpu.pipeline_mode<synchronous>, transform_indices = @transform_4, window_bounds = array<i64: 5, 32, 32>}, {pipeline_mode = #tpu.pipeline_mode<synchronous>, transform_indices = @transform_5, window_bounds = array<i64: 1, 32>}, {pipeline_mode = #tpu.pipeline_mode<synchronous>, transform_indices = @transform_6, window_bounds = array<i64: 1, 32>}, {pipeline_mode = #tpu.pipeline_mode<synchronous>, transform_indices = @transform_7, window_bounds = array<i64: 1, 32>}, {pipeline_mode = #tpu.pipeline_mode<synchronous>, transform_indices = @transform_8, window_bounds = array<i64: 8, 12>}, {pipeline_mode = #tpu.pipeline_mode<synchronous>, transform_indices = @transform_9, window_bounds = array<i64: 8, 12>}, {pipeline_mode = #tpu.pipeline_mode<synchronous>, transform_indices = @transform_10, window_bounds = array<i64: 8, 12>}, {pipeline_mode = #tpu.pipeline_mode<synchronous>, transform_indices = @transform_11, window_bounds = array<i64: 1, 12>}, {pipeline_mode = #tpu.pipeline_mode<synchronous>, transform_indices = @transform_12, window_bounds = array<i64: 1, 12>}, {pipeline_mode = #tpu.pipeline_mode<synchronous>, transform_indices = @transform_13, window_bounds = array<i64: 1, 12>}, {pipeline_mode = #tpu.pipeline_mode<synchronous>, transform_indices = @transform_14, window_bounds = array<i64: 12, 6>}, {pipeline_mode = #tpu.pipeline_mode<synchronous>, transform_indices = @transform_15, window_bounds = array<i64: 1, 6>}, {pipeline_mode = #tpu.pipeline_mode<synchronous>, transform_indices = @transform_16, window_bounds = array<i64: 1, 6>}, {pipeline_mode = #tpu.pipeline_mode<synchronous>, transform_indices = @transform_17, window_bounds = array<i64: 1, 6>}, {pipeline_mode = #tpu.pipeline_mode<synchronous>, transform_indices = @transform_18, window_bounds = array<i64: 6, 3>}, {pipeline_mode = #tpu.pipeline_mode<synchronous>, transform_indices = @transform_19, window_bounds = array<i64: 1, 3>}, {transform_indices = @transform_20, window_bounds = array<i64: 2, 3>}, {transform_indices = @transform_21, window_bounds = array<i64: 2, 6>}]} {
    %c0 = arith.constant 0 : index
    %c0_0 = arith.constant 0 : index
    %c0_1 = arith.constant 0 : index
    %0 = vector.load %arg3[%c0, %c0_0, %c0_1] : memref<2x12x32xf32, #tpu.memory_space<vmem>>, vector<2x12x32xf32>
    %c0_2 = arith.constant 0 : index
    %c0_3 = arith.constant 0 : index
    %1 = vector.load %arg8[%c0_2, %c0_3] : memref<1x32xf32, #tpu.memory_space<vmem>>, vector<1x32xf32>
    %c0_4 = arith.constant 0 : index
    %2 = memref.load %arg1[%c0_4] : memref<2xf32, #tpu.memory_space<smem>>
    %c1 = arith.constant 1 : index
    %3 = memref.load %arg1[%c1] : memref<2xf32, #tpu.memory_space<smem>>
    %c0_5 = arith.constant 0 : index
    %c0_6 = arith.constant 0 : index
    %4 = vector.load %arg2[%c0_5, %c0_6] : memref<2x8xf32, #tpu.memory_space<vmem>>, vector<2x8xf32>
    %c0_7 = arith.constant 0 : index
    %c0_8 = arith.constant 0 : index
    %5 = vector.load %arg9[%c0_7, %c0_8] : memref<8x12xf32, #tpu.memory_space<vmem>>, vector<8x12xf32>
    %cst = arith.constant dense<0.000000e+00> : vector<2x12xf32>
    %6 = tpu.matmul %4, %5, %cst {dimension_numbers = #tpu.dot_dimension_numbers<[1], [0], [0], [1], [0, 0, 1, 1], [], []>} : vector<2x8xf32>, vector<8x12xf32>, vector<2x12xf32> -> vector<2x12xf32>
    %c0_9 = arith.constant 0 : index
    %c0_10 = arith.constant 0 : index
    %7 = vector.load %arg12[%c0_9, %c0_10] : memref<1x12xf32, #tpu.memory_space<vmem>>, vector<1x12xf32>
    %8 = vector.broadcast %7 : vector<1x12xf32> to vector<2x12xf32>
    %9 = arith.addf %6, %8 : vector<2x12xf32>
    %c0_11 = arith.constant 0 : index
    %c0_12 = arith.constant 0 : index
    %10 = vector.load %arg6[%c0_11, %c0_12] : memref<1x32xf32, #tpu.memory_space<vmem>>, vector<1x32xf32>
    %11 = vector.extract_strided_slice %0 {offsets = [0, 1, 0], sizes = [2, 8, 32], strides = [1, 1, 1]} : vector<2x12x32xf32> to vector<2x8x32xf32>
    %c0_13 = arith.constant 0 : index
    %c0_14 = arith.constant 0 : index
    %c0_15 = arith.constant 0 : index
    %12 = vector.load %arg4[%c0_13, %c0_14, %c0_15] : memref<3x32x32xf32, #tpu.memory_space<vmem>>, vector<1x32x32xf32>
    %13 = vector.shape_cast %12 : vector<1x32x32xf32> to vector<32x32xf32>
    %cst_16 = arith.constant dense<0.000000e+00> : vector<2x8x32xf32>
    %14 = tpu.matmul %11, %13, %cst_16 {dimension_numbers = #tpu.dot_dimension_numbers<[2], [0], [0, 1], [1], [0, 0, 0, 1, 1, 1], [], []>} : vector<2x8x32xf32>, vector<32x32xf32>, vector<2x8x32xf32> -> vector<2x8x32xf32>
    %15 = vector.shape_cast %10 : vector<1x32xf32> to vector<1x1x32xf32>
    %16 = vector.broadcast %15 : vector<1x1x32xf32> to vector<2x8x32xf32>
    %17 = arith.addf %16, %14 : vector<2x8x32xf32>
    %18 = vector.extract_strided_slice %0 {offsets = [0, 2, 0], sizes = [2, 8, 32], strides = [1, 1, 1]} : vector<2x12x32xf32> to vector<2x8x32xf32>
    %c1_17 = arith.constant 1 : index
    %c0_18 = arith.constant 0 : index
    %c0_19 = arith.constant 0 : index
    %19 = vector.load %arg4[%c1_17, %c0_18, %c0_19] : memref<3x32x32xf32, #tpu.memory_space<vmem>>, vector<1x32x32xf32>
    %20 = vector.shape_cast %19 : vector<1x32x32xf32> to vector<32x32xf32>
    %cst_20 = arith.constant dense<0.000000e+00> : vector<2x8x32xf32>
    %21 = tpu.matmul %18, %20, %cst_20 {dimension_numbers = #tpu.dot_dimension_numbers<[2], [0], [0, 1], [1], [0, 0, 0, 1, 1, 1], [], []>} : vector<2x8x32xf32>, vector<32x32xf32>, vector<2x8x32xf32> -> vector<2x8x32xf32>
    %22 = arith.addf %17, %21 : vector<2x8x32xf32>
    %23 = vector.extract_strided_slice %0 {offsets = [0, 3, 0], sizes = [2, 8, 32], strides = [1, 1, 1]} : vector<2x12x32xf32> to vector<2x8x32xf32>
    %c2 = arith.constant 2 : index
    %c0_21 = arith.constant 0 : index
    %c0_22 = arith.constant 0 : index
    %24 = vector.load %arg4[%c2, %c0_21, %c0_22] : memref<3x32x32xf32, #tpu.memory_space<vmem>>, vector<1x32x32xf32>
    %25 = vector.shape_cast %24 : vector<1x32x32xf32> to vector<32x32xf32>
    %cst_23 = arith.constant dense<0.000000e+00> : vector<2x8x32xf32>
    %26 = tpu.matmul %23, %25, %cst_23 {dimension_numbers = #tpu.dot_dimension_numbers<[2], [0], [0, 1], [1], [0, 0, 0, 1, 1, 1], [], []>} : vector<2x8x32xf32>, vector<32x32xf32>, vector<2x8x32xf32> -> vector<2x8x32xf32>
    %27 = arith.addf %22, %26 : vector<2x8x32xf32>
    %cst_24 = arith.constant dense<0.000000e+00> : vector<2x8xf32>
    %28 = vector.multi_reduction <add>, %27, %cst_24 [2] : vector<2x8x32xf32> to vector<2x8xf32>
    %cst_25 = arith.constant 3.200000e+01 : f32
    %29 = vector.broadcast %cst_25 : f32 to vector<2x8xf32>
    %30 = arith.divf %28, %29 : vector<2x8xf32>
    %31 = arith.mulf %27, %27 : vector<2x8x32xf32>
    %cst_26 = arith.constant dense<0.000000e+00> : vector<2x8xf32>
    %32 = vector.multi_reduction <add>, %31, %cst_26 [2] : vector<2x8x32xf32> to vector<2x8xf32>
    %cst_27 = arith.constant 3.200000e+01 : f32
    %33 = vector.broadcast %cst_27 : f32 to vector<2x8xf32>
    %34 = arith.divf %32, %33 : vector<2x8xf32>
    %35 = arith.mulf %30, %30 : vector<2x8xf32>
    %36 = arith.subf %34, %35 : vector<2x8xf32>
    %37 = vector.shape_cast %1 : vector<1x32xf32> to vector<1x1x32xf32>
    %38 = vector.broadcast %37 : vector<1x1x32xf32> to vector<2x8x32xf32>
    %39 = arith.mulf %27, %38 : vector<2x8x32xf32>
    %cst_28 = arith.constant dense<0.000000e+00> : vector<2x8xf32>
    %40 = vector.multi_reduction <add>, %39, %cst_28 [2] : vector<2x8x32xf32> to vector<2x8xf32>
    %cst_29 = arith.constant 3.200000e+01 : f32
    %41 = vector.broadcast %cst_29 : f32 to vector<2x8xf32>
    %42 = arith.divf %40, %41 : vector<2x8xf32>
    %43 = vector.broadcast %2 : f32 to vector<2x8xf32>
    %44 = arith.mulf %30, %43 : vector<2x8xf32>
    %45 = arith.subf %42, %44 : vector<2x8xf32>
    %cst_30 = arith.constant 9.99999974E-6 : f32
    %46 = vector.broadcast %cst_30 : f32 to vector<2x8xf32>
    %47 = arith.addf %36, %46 : vector<2x8xf32>
    %48 = math.rsqrt %47 : vector<2x8xf32>
    %49 = arith.mulf %45, %48 : vector<2x8xf32>
    %50 = vector.broadcast %3 : f32 to vector<2x8xf32>
    %51 = arith.addf %49, %50 : vector<2x8xf32>
    %c0_31 = arith.constant 0 : index
    %c0_32 = arith.constant 0 : index
    %52 = vector.load %arg10[%c0_31, %c0_32] : memref<8x12xf32, #tpu.memory_space<vmem>>, vector<8x12xf32>
    %cst_33 = arith.constant dense<0.000000e+00> : vector<2x12xf32>
    %53 = tpu.matmul %51, %52, %cst_33 {dimension_numbers = #tpu.dot_dimension_numbers<[1], [0], [0], [1], [0, 0, 1, 1], [], []>} : vector<2x8xf32>, vector<8x12xf32>, vector<2x12xf32> -> vector<2x12xf32>
    %54 = arith.addf %9, %53 : vector<2x12xf32>
    %c0_34 = arith.constant 0 : index
    %c0_35 = arith.constant 0 : index
    %55 = vector.load %arg7[%c0_34, %c0_35] : memref<1x32xf32, #tpu.memory_space<vmem>>, vector<1x32xf32>
    %56 = vector.extract_strided_slice %0 {offsets = [0, 0, 0], sizes = [2, 8, 32], strides = [1, 1, 1]} : vector<2x12x32xf32> to vector<2x8x32xf32>
    %c0_36 = arith.constant 0 : index
    %c0_37 = arith.constant 0 : index
    %c0_38 = arith.constant 0 : index
    %57 = vector.load %arg5[%c0_36, %c0_37, %c0_38] : memref<5x32x32xf32, #tpu.memory_space<vmem>>, vector<1x32x32xf32>
    %58 = vector.shape_cast %57 : vector<1x32x32xf32> to vector<32x32xf32>
    %cst_39 = arith.constant dense<0.000000e+00> : vector<2x8x32xf32>
    %59 = tpu.matmul %56, %58, %cst_39 {dimension_numbers = #tpu.dot_dimension_numbers<[2], [0], [0, 1], [1], [0, 0, 0, 1, 1, 1], [], []>} : vector<2x8x32xf32>, vector<32x32xf32>, vector<2x8x32xf32> -> vector<2x8x32xf32>
    %60 = vector.shape_cast %55 : vector<1x32xf32> to vector<1x1x32xf32>
    %61 = vector.broadcast %60 : vector<1x1x32xf32> to vector<2x8x32xf32>
    %62 = arith.addf %61, %59 : vector<2x8x32xf32>
    %63 = vector.extract_strided_slice %0 {offsets = [0, 1, 0], sizes = [2, 8, 32], strides = [1, 1, 1]} : vector<2x12x32xf32> to vector<2x8x32xf32>
    %c1_40 = arith.constant 1 : index
    %c0_41 = arith.constant 0 : index
    %c0_42 = arith.constant 0 : index
    %64 = vector.load %arg5[%c1_40, %c0_41, %c0_42] : memref<5x32x32xf32, #tpu.memory_space<vmem>>, vector<1x32x32xf32>
    %65 = vector.shape_cast %64 : vector<1x32x32xf32> to vector<32x32xf32>
    %cst_43 = arith.constant dense<0.000000e+00> : vector<2x8x32xf32>
    %66 = tpu.matmul %63, %65, %cst_43 {dimension_numbers = #tpu.dot_dimension_numbers<[2], [0], [0, 1], [1], [0, 0, 0, 1, 1, 1], [], []>} : vector<2x8x32xf32>, vector<32x32xf32>, vector<2x8x32xf32> -> vector<2x8x32xf32>
    %67 = arith.addf %62, %66 : vector<2x8x32xf32>
    %68 = vector.extract_strided_slice %0 {offsets = [0, 2, 0], sizes = [2, 8, 32], strides = [1, 1, 1]} : vector<2x12x32xf32> to vector<2x8x32xf32>
    %c2_44 = arith.constant 2 : index
    %c0_45 = arith.constant 0 : index
    %c0_46 = arith.constant 0 : index
    %69 = vector.load %arg5[%c2_44, %c0_45, %c0_46] : memref<5x32x32xf32, #tpu.memory_space<vmem>>, vector<1x32x32xf32>
    %70 = vector.shape_cast %69 : vector<1x32x32xf32> to vector<32x32xf32>
    %cst_47 = arith.constant dense<0.000000e+00> : vector<2x8x32xf32>
    %71 = tpu.matmul %68, %70, %cst_47 {dimension_numbers = #tpu.dot_dimension_numbers<[2], [0], [0, 1], [1], [0, 0, 0, 1, 1, 1], [], []>} : vector<2x8x32xf32>, vector<32x32xf32>, vector<2x8x32xf32> -> vector<2x8x32xf32>
    %72 = arith.addf %67, %71 : vector<2x8x32xf32>
    %73 = vector.extract_strided_slice %0 {offsets = [0, 3, 0], sizes = [2, 8, 32], strides = [1, 1, 1]} : vector<2x12x32xf32> to vector<2x8x32xf32>
    %c3 = arith.constant 3 : index
    %c0_48 = arith.constant 0 : index
    %c0_49 = arith.constant 0 : index
    %74 = vector.load %arg5[%c3, %c0_48, %c0_49] : memref<5x32x32xf32, #tpu.memory_space<vmem>>, vector<1x32x32xf32>
    %75 = vector.shape_cast %74 : vector<1x32x32xf32> to vector<32x32xf32>
    %cst_50 = arith.constant dense<0.000000e+00> : vector<2x8x32xf32>
    %76 = tpu.matmul %73, %75, %cst_50 {dimension_numbers = #tpu.dot_dimension_numbers<[2], [0], [0, 1], [1], [0, 0, 0, 1, 1, 1], [], []>} : vector<2x8x32xf32>, vector<32x32xf32>, vector<2x8x32xf32> -> vector<2x8x32xf32>
    %77 = arith.addf %72, %76 : vector<2x8x32xf32>
    %78 = vector.extract_strided_slice %0 {offsets = [0, 4, 0], sizes = [2, 8, 32], strides = [1, 1, 1]} : vector<2x12x32xf32> to vector<2x8x32xf32>
    %c4 = arith.constant 4 : index
    %c0_51 = arith.constant 0 : index
    %c0_52 = arith.constant 0 : index
    %79 = vector.load %arg5[%c4, %c0_51, %c0_52] : memref<5x32x32xf32, #tpu.memory_space<vmem>>, vector<1x32x32xf32>
    %80 = vector.shape_cast %79 : vector<1x32x32xf32> to vector<32x32xf32>
    %cst_53 = arith.constant dense<0.000000e+00> : vector<2x8x32xf32>
    %81 = tpu.matmul %78, %80, %cst_53 {dimension_numbers = #tpu.dot_dimension_numbers<[2], [0], [0, 1], [1], [0, 0, 0, 1, 1, 1], [], []>} : vector<2x8x32xf32>, vector<32x32xf32>, vector<2x8x32xf32> -> vector<2x8x32xf32>
    %82 = arith.addf %77, %81 : vector<2x8x32xf32>
    %cst_54 = arith.constant dense<0.000000e+00> : vector<2x8xf32>
    %83 = vector.multi_reduction <add>, %82, %cst_54 [2] : vector<2x8x32xf32> to vector<2x8xf32>
    %cst_55 = arith.constant 3.200000e+01 : f32
    %84 = vector.broadcast %cst_55 : f32 to vector<2x8xf32>
    %85 = arith.divf %83, %84 : vector<2x8xf32>
    %86 = arith.mulf %82, %82 : vector<2x8x32xf32>
    %cst_56 = arith.constant dense<0.000000e+00> : vector<2x8xf32>
    %87 = vector.multi_reduction <add>, %86, %cst_56 [2] : vector<2x8x32xf32> to vector<2x8xf32>
    %cst_57 = arith.constant 3.200000e+01 : f32
    %88 = vector.broadcast %cst_57 : f32 to vector<2x8xf32>
    %89 = arith.divf %87, %88 : vector<2x8xf32>
    %90 = arith.mulf %85, %85 : vector<2x8xf32>
    %91 = arith.subf %89, %90 : vector<2x8xf32>
    %92 = vector.shape_cast %1 : vector<1x32xf32> to vector<1x1x32xf32>
    %93 = vector.broadcast %92 : vector<1x1x32xf32> to vector<2x8x32xf32>
    %94 = arith.mulf %82, %93 : vector<2x8x32xf32>
    %cst_58 = arith.constant dense<0.000000e+00> : vector<2x8xf32>
    %95 = vector.multi_reduction <add>, %94, %cst_58 [2] : vector<2x8x32xf32> to vector<2x8xf32>
    %cst_59 = arith.constant 3.200000e+01 : f32
    %96 = vector.broadcast %cst_59 : f32 to vector<2x8xf32>
    %97 = arith.divf %95, %96 : vector<2x8xf32>
    %98 = vector.broadcast %2 : f32 to vector<2x8xf32>
    %99 = arith.mulf %85, %98 : vector<2x8xf32>
    %100 = arith.subf %97, %99 : vector<2x8xf32>
    %cst_60 = arith.constant 9.99999974E-6 : f32
    %101 = vector.broadcast %cst_60 : f32 to vector<2x8xf32>
    %102 = arith.addf %91, %101 : vector<2x8xf32>
    %103 = math.rsqrt %102 : vector<2x8xf32>
    %104 = arith.mulf %100, %103 : vector<2x8xf32>
    %105 = vector.broadcast %3 : f32 to vector<2x8xf32>
    %106 = arith.addf %104, %105 : vector<2x8xf32>
    %c0_61 = arith.constant 0 : index
    %c0_62 = arith.constant 0 : index
    %107 = vector.load %arg11[%c0_61, %c0_62] : memref<8x12xf32, #tpu.memory_space<vmem>>, vector<8x12xf32>
    %cst_63 = arith.constant dense<0.000000e+00> : vector<2x12xf32>
    %108 = tpu.matmul %106, %107, %cst_63 {dimension_numbers = #tpu.dot_dimension_numbers<[1], [0], [0], [1], [0, 0, 1, 1], [], []>} : vector<2x8xf32>, vector<8x12xf32>, vector<2x12xf32> -> vector<2x12xf32>
    %109 = arith.addf %54, %108 : vector<2x12xf32>
    %110 = math.tanh %109 : vector<2x12xf32>
    %c0_64 = arith.constant 0 : index
    %c0_65 = arith.constant 0 : index
    %111 = vector.load %arg13[%c0_64, %c0_65] : memref<1x12xf32, #tpu.memory_space<vmem>>, vector<1x12xf32>
    %c0_66 = arith.constant 0 : index
    %c0_67 = arith.constant 0 : index
    %112 = vector.load %arg14[%c0_66, %c0_67] : memref<1x12xf32, #tpu.memory_space<vmem>>, vector<1x12xf32>
    %cst_68 = arith.constant dense<0.000000e+00> : vector<2xf32>
    %113 = vector.multi_reduction <add>, %110, %cst_68 [1] : vector<2x12xf32> to vector<2xf32>
    %114 = vector.shape_cast %113 : vector<2xf32> to vector<2x1xf32>
    %cst_69 = arith.constant 1.200000e+01 : f32
    %115 = vector.broadcast %cst_69 : f32 to vector<2x1xf32>
    %116 = arith.divf %114, %115 : vector<2x1xf32>
    %117 = vector.broadcast %116 : vector<2x1xf32> to vector<2x12xf32>
    %118 = arith.subf %110, %117 : vector<2x12xf32>
    %119 = arith.mulf %118, %118 : vector<2x12xf32>
    %cst_70 = arith.constant dense<0.000000e+00> : vector<2xf32>
    %120 = vector.multi_reduction <add>, %119, %cst_70 [1] : vector<2x12xf32> to vector<2xf32>
    %121 = vector.shape_cast %120 : vector<2xf32> to vector<2x1xf32>
    %cst_71 = arith.constant 1.200000e+01 : f32
    %122 = vector.broadcast %cst_71 : f32 to vector<2x1xf32>
    %123 = arith.divf %121, %122 : vector<2x1xf32>
    %124 = vector.broadcast %116 : vector<2x1xf32> to vector<2x12xf32>
    %125 = arith.subf %110, %124 : vector<2x12xf32>
    %cst_72 = arith.constant 9.99999974E-6 : f32
    %126 = vector.broadcast %cst_72 : f32 to vector<2x1xf32>
    %127 = arith.addf %123, %126 : vector<2x1xf32>
    %128 = math.rsqrt %127 : vector<2x1xf32>
    %129 = vector.broadcast %128 : vector<2x1xf32> to vector<2x12xf32>
    %130 = arith.mulf %125, %129 : vector<2x12xf32>
    %131 = vector.broadcast %111 : vector<1x12xf32> to vector<2x12xf32>
    %132 = arith.mulf %130, %131 : vector<2x12xf32>
    %133 = vector.broadcast %112 : vector<1x12xf32> to vector<2x12xf32>
    %134 = arith.addf %132, %133 : vector<2x12xf32>
    %c0_73 = arith.constant 0 : index
    %c0_74 = arith.constant 0 : index
    %135 = vector.load %arg15[%c0_73, %c0_74] : memref<12x6xf32, #tpu.memory_space<vmem>>, vector<12x6xf32>
    %cst_75 = arith.constant dense<0.000000e+00> : vector<2x6xf32>
    %136 = tpu.matmul %134, %135, %cst_75 {dimension_numbers = #tpu.dot_dimension_numbers<[1], [0], [0], [1], [0, 0, 1, 1], [], []>} : vector<2x12xf32>, vector<12x6xf32>, vector<2x6xf32> -> vector<2x6xf32>
    %c0_76 = arith.constant 0 : index
    %c0_77 = arith.constant 0 : index
    %137 = vector.load %arg16[%c0_76, %c0_77] : memref<1x6xf32, #tpu.memory_space<vmem>>, vector<1x6xf32>
    %138 = vector.broadcast %137 : vector<1x6xf32> to vector<2x6xf32>
    %139 = arith.addf %136, %138 : vector<2x6xf32>
    %cst_78 = arith.constant 0.000000e+00 : f32
    %140 = vector.broadcast %cst_78 : f32 to vector<2x6xf32>
    %141 = arith.cmpf oge, %139, %140 : vector<2x6xf32>
    %cst_79 = arith.constant 2.000000e-01 : f32
    %142 = vector.broadcast %cst_79 : f32 to vector<2x6xf32>
    %143 = arith.mulf %142, %139 : vector<2x6xf32>
    %144 = arith.select %141, %139, %143 : vector<2x6xi1>, vector<2x6xf32>
    %c0_80 = arith.constant 0 : index
    %c0_81 = arith.constant 0 : index
    %145 = vector.load %arg17[%c0_80, %c0_81] : memref<1x6xf32, #tpu.memory_space<vmem>>, vector<1x6xf32>
    %c0_82 = arith.constant 0 : index
    %c0_83 = arith.constant 0 : index
    %146 = vector.load %arg18[%c0_82, %c0_83] : memref<1x6xf32, #tpu.memory_space<vmem>>, vector<1x6xf32>
    %cst_84 = arith.constant dense<0.000000e+00> : vector<2xf32>
    %147 = vector.multi_reduction <add>, %144, %cst_84 [1] : vector<2x6xf32> to vector<2xf32>
    %148 = vector.shape_cast %147 : vector<2xf32> to vector<2x1xf32>
    %cst_85 = arith.constant 6.000000e+00 : f32
    %149 = vector.broadcast %cst_85 : f32 to vector<2x1xf32>
    %150 = arith.divf %148, %149 : vector<2x1xf32>
    %151 = vector.broadcast %150 : vector<2x1xf32> to vector<2x6xf32>
    %152 = arith.subf %144, %151 : vector<2x6xf32>
    %153 = arith.mulf %152, %152 : vector<2x6xf32>
    %cst_86 = arith.constant dense<0.000000e+00> : vector<2xf32>
    %154 = vector.multi_reduction <add>, %153, %cst_86 [1] : vector<2x6xf32> to vector<2xf32>
    %155 = vector.shape_cast %154 : vector<2xf32> to vector<2x1xf32>
    %cst_87 = arith.constant 6.000000e+00 : f32
    %156 = vector.broadcast %cst_87 : f32 to vector<2x1xf32>
    %157 = arith.divf %155, %156 : vector<2x1xf32>
    %158 = vector.broadcast %150 : vector<2x1xf32> to vector<2x6xf32>
    %159 = arith.subf %144, %158 : vector<2x6xf32>
    %cst_88 = arith.constant 9.99999974E-6 : f32
    %160 = vector.broadcast %cst_88 : f32 to vector<2x1xf32>
    %161 = arith.addf %157, %160 : vector<2x1xf32>
    %162 = math.rsqrt %161 : vector<2x1xf32>
    %163 = vector.broadcast %162 : vector<2x1xf32> to vector<2x6xf32>
    %164 = arith.mulf %159, %163 : vector<2x6xf32>
    %165 = vector.broadcast %145 : vector<1x6xf32> to vector<2x6xf32>
    %166 = arith.mulf %164, %165 : vector<2x6xf32>
    %167 = vector.broadcast %146 : vector<1x6xf32> to vector<2x6xf32>
    %168 = arith.addf %166, %167 : vector<2x6xf32>
    %c0_89 = arith.constant 0 : index
    %c0_90 = arith.constant 0 : index
    %169 = vector.load %arg19[%c0_89, %c0_90] : memref<6x3xf32, #tpu.memory_space<vmem>>, vector<6x3xf32>
    %cst_91 = arith.constant dense<0.000000e+00> : vector<2x3xf32>
    %170 = tpu.matmul %168, %169, %cst_91 {dimension_numbers = #tpu.dot_dimension_numbers<[1], [0], [0], [1], [0, 0, 1, 1], [], []>} : vector<2x6xf32>, vector<6x3xf32>, vector<2x3xf32> -> vector<2x3xf32>
    %c0_92 = arith.constant 0 : index
    %c0_93 = arith.constant 0 : index
    %171 = vector.load %arg20[%c0_92, %c0_93] : memref<1x3xf32, #tpu.memory_space<vmem>>, vector<1x3xf32>
    %172 = vector.broadcast %171 : vector<1x3xf32> to vector<2x3xf32>
    %173 = arith.addf %170, %172 : vector<2x3xf32>
    %c0_94 = arith.constant 0 : index
    %c0_95 = arith.constant 0 : index
    %174 = vector.load %arg21[%c0_94, %c0_95] : memref<2x3xf32, #tpu.memory_space<vmem>>, vector<2x3xf32>
    tpu.vector_store %arg21[%c0_94, %c0_95], %173 {strides = array<i32>} : memref<2x3xf32, #tpu.memory_space<vmem>>, vector<2x3xf32>,
    %c0_96 = arith.constant 0 : index
    %c0_97 = arith.constant 0 : index
    %175 = vector.load %arg22[%c0_96, %c0_97] : memref<2x6xf32, #tpu.memory_space<vmem>>, vector<2x6xf32>
    tpu.vector_store %arg22[%c0_96, %c0_97], %168 {strides = array<i32>} : memref<2x6xf32, #tpu.memory_space<vmem>>, vector<2x6xf32>,
    return
  }
  func.func @transform_0(%arg0: i32) -> i32 {
    %c0_i32 = arith.constant 0 : i32
    %c0_i32_0 = arith.constant 0 : i32
    return %c0_i32 : i32
  }
  func.func @transform_1(%arg0: i32) -> (i32, i32) {
    %c0_i32 = arith.constant 0 : i32
    %c0_i32_0 = arith.constant 0 : i32
    return %arg0, %c0_i32 : i32, i32
  }
  func.func @transform_2(%arg0: i32) -> (i32, i32, i32) {
    %c0_i32 = arith.constant 0 : i32
    %c0_i32_0 = arith.constant 0 : i32
    %c0_i32_1 = arith.constant 0 : i32
    return %arg0, %c0_i32, %c0_i32_0 : i32, i32, i32
  }
  func.func @transform_3(%arg0: i32) -> (i32, i32, i32) {
    %c0_i32 = arith.constant 0 : i32
    %c0_i32_0 = arith.constant 0 : i32
    %c0_i32_1 = arith.constant 0 : i32
    %c0_i32_2 = arith.constant 0 : i32
    return %c0_i32, %c0_i32_0, %c0_i32_1 : i32, i32, i32
  }
  func.func @transform_4(%arg0: i32) -> (i32, i32, i32) {
    %c0_i32 = arith.constant 0 : i32
    %c0_i32_0 = arith.constant 0 : i32
    %c0_i32_1 = arith.constant 0 : i32
    %c0_i32_2 = arith.constant 0 : i32
    return %c0_i32, %c0_i32_0, %c0_i32_1 : i32, i32, i32
  }
  func.func @transform_5(%arg0: i32) -> (i32, i32) {
    %c0_i32 = arith.constant 0 : i32
    %c0_i32_0 = arith.constant 0 : i32
    %c0_i32_1 = arith.constant 0 : i32
    return %c0_i32, %c0_i32_0 : i32, i32
  }
  func.func @transform_6(%arg0: i32) -> (i32, i32) {
    %c0_i32 = arith.constant 0 : i32
    %c0_i32_0 = arith.constant 0 : i32
    %c0_i32_1 = arith.constant 0 : i32
    return %c0_i32, %c0_i32_0 : i32, i32
  }
  func.func @transform_7(%arg0: i32) -> (i32, i32) {
    %c0_i32 = arith.constant 0 : i32
    %c0_i32_0 = arith.constant 0 : i32
    %c0_i32_1 = arith.constant 0 : i32
    return %c0_i32, %c0_i32_0 : i32, i32
  }
  func.func @transform_8(%arg0: i32) -> (i32, i32) {
    %c0_i32 = arith.constant 0 : i32
    %c0_i32_0 = arith.constant 0 : i32
    %c0_i32_1 = arith.constant 0 : i32
    return %c0_i32, %c0_i32_0 : i32, i32
  }
  func.func @transform_9(%arg0: i32) -> (i32, i32) {
    %c0_i32 = arith.constant 0 : i32
    %c0_i32_0 = arith.constant 0 : i32
    %c0_i32_1 = arith.constant 0 : i32
    return %c0_i32, %c0_i32_0 : i32, i32
  }
  func.func @transform_10(%arg0: i32) -> (i32, i32) {
    %c0_i32 = arith.constant 0 : i32
    %c0_i32_0 = arith.constant 0 : i32
    %c0_i32_1 = arith.constant 0 : i32
    return %c0_i32, %c0_i32_0 : i32, i32
  }
  func.func @transform_11(%arg0: i32) -> (i32, i32) {
    %c0_i32 = arith.constant 0 : i32
    %c0_i32_0 = arith.constant 0 : i32
    %c0_i32_1 = arith.constant 0 : i32
    return %c0_i32, %c0_i32_0 : i32, i32
  }
  func.func @transform_12(%arg0: i32) -> (i32, i32) {
    %c0_i32 = arith.constant 0 : i32
    %c0_i32_0 = arith.constant 0 : i32
    %c0_i32_1 = arith.constant 0 : i32
    return %c0_i32, %c0_i32_0 : i32, i32
  }
  func.func @transform_13(%arg0: i32) -> (i32, i32) {
    %c0_i32 = arith.constant 0 : i32
    %c0_i32_0 = arith.constant 0 : i32
    %c0_i32_1 = arith.constant 0 : i32
    return %c0_i32, %c0_i32_0 : i32, i32
  }
  func.func @transform_14(%arg0: i32) -> (i32, i32) {
    %c0_i32 = arith.constant 0 : i32
    %c0_i32_0 = arith.constant 0 : i32
    %c0_i32_1 = arith.constant 0 : i32
    return %c0_i32, %c0_i32_0 : i32, i32
  }
  func.func @transform_15(%arg0: i32) -> (i32, i32) {
    %c0_i32 = arith.constant 0 : i32
    %c0_i32_0 = arith.constant 0 : i32
    %c0_i32_1 = arith.constant 0 : i32
    return %c0_i32, %c0_i32_0 : i32, i32
  }
  func.func @transform_16(%arg0: i32) -> (i32, i32) {
    %c0_i32 = arith.constant 0 : i32
    %c0_i32_0 = arith.constant 0 : i32
    %c0_i32_1 = arith.constant 0 : i32
    return %c0_i32, %c0_i32_0 : i32, i32
  }
  func.func @transform_17(%arg0: i32) -> (i32, i32) {
    %c0_i32 = arith.constant 0 : i32
    %c0_i32_0 = arith.constant 0 : i32
    %c0_i32_1 = arith.constant 0 : i32
    return %c0_i32, %c0_i32_0 : i32, i32
  }
  func.func @transform_18(%arg0: i32) -> (i32, i32) {
    %c0_i32 = arith.constant 0 : i32
    %c0_i32_0 = arith.constant 0 : i32
    %c0_i32_1 = arith.constant 0 : i32
    return %c0_i32, %c0_i32_0 : i32, i32
  }
  func.func @transform_19(%arg0: i32) -> (i32, i32) {
    %c0_i32 = arith.constant 0 : i32
    %c0_i32_0 = arith.constant 0 : i32
    %c0_i32_1 = arith.constant 0 : i32
    return %c0_i32, %c0_i32_0 : i32, i32
  }
  func.func @transform_20(%arg0: i32) -> (i32, i32) {
    %c0_i32 = arith.constant 0 : i32
    %c0_i32_0 = arith.constant 0 : i32
    return %arg0, %c0_i32 : i32, i32
  }
  func.func @transform_21(%arg0: i32) -> (i32, i32) {
    %c0_i32 = arith.constant 0 : i32
    %c0_i32_0 = arith.constant 0 : i32
    return %arg0, %c0_i32 : i32, i32
  }
}

</mosaic_0001>

<bundles_post_ra>
// kernel: tpu_custom_call.1
= control target key start
LH: loop header
LB: loop body
LE: loop exit
PB: predicated region body
PF: predicated region fallthrough
CT: control target
= control target key end

     0   :  { %s1363_s0 = inlined_call_operand.vmem [shape: f32[2], index: 0, kind: input, shape index: {}]   ;;  %s1364_s1 = inlined_call_operand.vmem [shape: f32[2,8], index: 1, kind: input, shape index: {}]   ;;  %s1365_s2 = inlined_call_operand.vmem [shape: f32[2,12,32], index: 2, kind: input, shape index: {}]   ;;  %s1366_s3 = inlined_call_operand.hbm [shape: f32[3,32,32], index: 3, kind: input, shape index: {}]   ;;  %s1367_s4 = inlined_call_operand.hbm [shape: f32[5,32,32], index: 4, kind: input, shape index: {}]   ;;  %s1368_s5 = inlined_call_operand.vmem [shape: f32[1,32], index: 5, kind: input, shape index: {}]   ;;  %s1369_s6 = inlined_call_operand.vmem [shape: f32[1,32], index: 6, kind: input, shape index: {}]   ;;  %s1370_s7 = inlined_call_operand.vmem [shape: f32[1,32], index: 7, kind: input, shape index: {}]   ;;  %s1371_s8 = inlined_call_operand.vmem [shape: f32[8,12], index: 8, kind: input, shape index: {}]   ;;  %s1372_s9 = inlined_call_operand.vmem [shape: f32[8,12], index: 9, kind: input, shape index: {}]   ;;  %s1373_s10 = inlined_call_operand.vmem [shape: f32[8,12], index: 10, kind: input, shape index: {}]   ;;  %s1374_s11 = inlined_call_operand.vmem [shape: f32[1,12], index: 11, kind: input, shape index: {}]   ;;  %s1375_s12 = inlined_call_operand.vmem [shape: f32[1,12], index: 12, kind: input, shape index: {}]   ;;  %s1376_s13 = inlined_call_operand.vmem [shape: f32[1,12], index: 13, kind: input, shape index: {}]   ;;  %s1377_s14 = inlined_call_operand.vmem [shape: f32[12,6], index: 14, kind: input, shape index: {}]   ;;  %s1378_s15 = inlined_call_operand.vmem [shape: f32[1,6], index: 15, kind: input, shape index: {}]   ;;  %s1379_s16 = inlined_call_operand.vmem [shape: f32[1,6], index: 16, kind: input, shape index: {}]   ;;  %s1380_s17 = inlined_call_operand.vmem [shape: f32[1,6], index: 17, kind: input, shape index: {}]   ;;  %s1381_s18 = inlined_call_operand.vmem [shape: f32[6,3], index: 18, kind: input, shape index: {}]   ;;  %s1382_s19 = inlined_call_operand.vmem [shape: f32[1,3], index: 19, kind: input, shape index: {}]   ;;  %s1383_s20 = inlined_call_operand.hbm [shape: f32[2,3], index: 20, kind: output, shape index: {0}]   ;;  %s1384_s21 = inlined_call_operand.hbm [shape: f32[2,6], index: 21, kind: output, shape index: {1}]  }
   0x1   :  { %1386 = sst [smem:[#allocation17_spill]] %s1363_s0 }
   0x2   :  { %1387 = sst [smem:[#allocation18_spill]] %s1364_s1 }
   0x3   :  { %1388 = sst [smem:[#allocation19_spill]] %s1365_s2 }
   0x4   :  { %1389 = sst [smem:[#allocation20_spill]] %s1366_s3 }
   0x5   :  { %1390 = sst [smem:[#allocation21_spill]] %s1367_s4 }
   0x6   :  { %1391 = sst [smem:[#allocation22_spill]] %s1368_s5 }
   0x7   :  { %1392 = sst [smem:[#allocation23_spill]] %s1382_s19 }
   0x8   :  { %1393 = sst [smem:[#allocation24_spill]] %s1383_s20 }
   0x9   :  { %27 = vsyncpa [#allocation5], 0 }
   0xa   :  { %28 = vsyncpa [#allocation3], 0 }
   0xb   :  { %29 = vsyncpa [#allocation8], 0 }
   0xc   :  { %30 = vsyncpa [#allocation4], 0 }
   0xd   :  { %31 = vsyncpa [#allocation11], 0  ;;  %s1394_s26 = sld [smem:[#allocation17_spill]]  ;;  %s1016_s4 = smov [#allocation2]  }
   0xe   :  { %s1395_s29 = sld [smem:[#allocation20_spill]]  ;;  %s1017_s30 = smov [#allocation6]  }
   0xf   :  { %s51_s5 = sshll.u32 %s1017_s30, 4  ;;  %s1018_s22 = smov 128   ;;  %s52_s5 = int_to_ptr.vmem [resolvable:$true] %s51_s5 }
  0x10   :  { %s1019_s23 = smov 8   ;;  %s1396_s20 = sld [smem:[#allocation21_spill]] }
  0x11   :  { %s1020_s2 = smov [#allocation7]  }
  0x12   :  { %s64_s25 = sshll.u32 %s1020_s2, 4  ;;  %s65_s25 = int_to_ptr.vmem [resolvable:$true] %s64_s25 }
  0x13   :  { %s37_s27 = sshll.u32 %s1394_s26, 4  ;;  %s38_s27 = int_to_ptr.vmem [resolvable:$true] %s37_s27 }
  0x14   :  { %s49_s0 = sshll.u32 %s1395_s29, 4  ;;  %s50_s0 = int_to_ptr.hbm [resolvable:$true] %s49_s0 }
  0x15   :  { %40 = dma.vmem_to_smem %s38_s27, 16, %s1016_s4, [#allocation5]  }
  0x16   :  { %57 = dma.hbm_to_vmem [thread:$0]  %s50_s0, 1536, %s52_s5, [#allocation3], %s1018_s22, %s1018_s22, %s1019_s23  }
  0x17   :  { %s62_s19 = sshll.u32 %s1396_s20, 4  ;;  %s63_s19 = int_to_ptr.hbm [resolvable:$true] %s62_s19 }
  0x18   :  { %70 = dma.hbm_to_vmem [thread:$0]  %s63_s19, 2560, %s65_s25, [#allocation8], %s1018_s22, %s1018_s22, %s1019_s23  }
  0x19   :  { %1006 = dma.done.wait [#allocation5], 16  }
  0x1a   :  { %1007 = vsyncadd [#allocation5], 4294967280 }
  0x1b   :  { %1008 = dma.done.wait [#allocation3], 1536  }
  0x1c   :  { %1009 = vsyncadd [#allocation3], 4294965760 }
  0x1d   :  { %1010 = dma.done.wait [#allocation8], 2560  }
  0x1e   :  { %1011 = vsyncadd [#allocation8], 4294964736 }
  0x1f   :  { %113 = sfence }
  0x20   :  { %v204_v0 = vld [vmem:[#allocation6 + $0x38] sm:$0xff]  ;;  %v203_v1 = vld [vmem:[#allocation6 + $0x30] sm:$0xff]  ;;  %v202_v5 = vld [vmem:[#allocation6 + $0x28] sm:$0xff]  ;;  %vm205_vm0 = vcmask 1045504   ;;  %s1397_s26 = sld [smem:[#allocation19_spill]]  ;;  %vm246_vm1 = vcmask 1044480  }
  0x21   :  { %v245_v2 = vld [vmem:[#allocation6 + $0x58] sm:$0xff]  ;;  %228 = vmatpush.msra.mxu2 %v204_v0  ;;  %v244_v4 = vld [vmem:[#allocation6 + $0x50] sm:$0xff]  ;;  %v243_v7 = vld [vmem:[#allocation6 + $0x48] sm:$0xff]  ;;  %vm160_vm2 = vcmask 1046528   ;;  %vm167_vm3 = vcmask 261120   ;;  %s1398_s22 = sld [smem:[#allocation22_spill]] }
  0x22   :  { %269 = vmatpush.msra.mxu3 %v245_v2  ;;  %v155_v3 = vld [vmem:[#allocation6 + $0x18] sm:$0xff]  ;;  %v154_v6 = vld [vmem:[#allocation6 + $0x10] sm:$0xff]  ;;  %v153_v10 = vld [vmem:[#allocation6 + $0x8] sm:$0xff]  ;;  %v1021_v58 = vmov 32.0   ;;  %s1399_s19 = sld [smem:[#allocation18_spill]]  ;;  %vm127_vm5 = vcmask 64512  }
  0x23   :  { %184 = vmatpush.msra.mxu1 %v155_v3  ;;  %229 = vmatpush.msra.mxu2 %v203_v1  ;;  %v201_v11 = vld [vmem:[#allocation6 + $0x20] sm:$0xff]  ;;  %878 = vrcp.f32 %v1021_v58  ;;  %vm363_vm12 = vcmask 1041409   ;;  %vm520_vm13 = vcmask 1043456   ;;  %s1024_s25 = smov [#allocation10]   ;;  %s1400_s27 = sld [smem:[#allocation23_spill]] }
  0x24   :  { %270 = vmatpush.msra.mxu3 %v244_v4  ;;  %v242_v14 = vld [vmem:[#allocation6 + $0x40] sm:$0xff] }
  0x25   :  { %185 = vmatpush.msra.mxu1 %v154_v6  ;;  %230 = vmatpush.msra.mxu2 %v202_v5  ;;  %v152_v23 = vld [vmem:[#allocation6] sm:$0xff] }
  0x26   :  { %v1148_v8 = vld [vmem:[%s1397_s26] sm:$0xff]  ;;  %v1153_v9 = vld [vmem:[%s1397_s26 + $0x8] sm:$0xf]  ;;  %271 = vmatpush.msra.mxu3 %v243_v7  ;;  %v1164_v19 = vld [vmem:[%s1397_s26 + $0x10] sm:$0xff] }
  0x27   :  { %v206_v12 = vrot.slane %v1148_v8, 2  ;;  %v207_v13 = vrot.slane %v1153_v9, 2  ;;  %v247_v15 = vrot.slane %v1148_v8, 3  ;;  %v248_v16 = vrot.slane %v1153_v9, 3  ;;  %v1169_v20 = vld [vmem:[%s1397_s26 + $0x18] sm:$0xf]  ;;  %186 = vmatpush.msra.mxu1 %v153_v10  ;;  %231 = vmatpush.msra.mxu2 %v201_v11 }
  0x28   :  { %v161_v17 = vrot.slane %v1148_v8, 1  ;;  %v162_v18 = vrot.slane %v1153_v9, 1  ;;  %272 = vmatpush.msra.mxu3 %v242_v14  ;;  %v209_v25 = vrot.slane %v1164_v19, 2  ;;  %v210_v26 = vrot.slane %v1169_v20, 2  ;;  %v868_v34 = vld [vmem:[%s1398_s22] ss:$0 sm:$0xff] }
  0x29   :  { %v1172_v21 = vsel %vm205_vm0, %v206_v12, %v207_v13  ;;  %v1175_v22 = vsel %vm246_vm1, %v247_v15, %v248_v16  ;;  %v250_v27 = vrot.slane %v1164_v19, 3  ;;  %v251_v28 = vrot.slane %v1169_v20, 3  ;;  %187 = vmatpush.msra.mxu1 %v152_v23  ;;  %v1213_v40 = vld [vmem:[%s1370_s7] ss:$0 sm:$0xff]  ;;  %v879_v59 = vpop.eup %878  ;;  %v459_v11 = vld [vmem:[#allocation7 + $0x58] sm:$0xff]  ;;  %v458_v23 = vld [vmem:[#allocation7 + $0x50] sm:$0xff] }
  0x2a   :  { %v1178_v24 = vsel %vm160_vm2, %v161_v17, %v162_v18  ;;  %838 = vmatmul.msk.f32.vlgmr.msra.gmra.mxu2 %vm167_vm3, %v1172_v21  ;;  %840 = vmatmul.msk.f32.vlgmr.msra.gmra.mxu3 %vm167_vm3, %v1175_v22  ;;  %v164_v29 = vrot.slane %v1164_v19, 1  ;;  %v165_v30 = vrot.slane %v1169_v20, 1  ;;  %v1193_v31 = vsel %vm205_vm0, %v209_v25, %v210_v26  ;;  %v122_v2 = vld [vmem:[%s1371_s8] sm:$0xff]  ;;  %v392_v17 = vld [vmem:[#allocation7 + $0x18] sm:$0xff]  ;;  %s119_s8 = sld [smem:[#allocation2]] }
  0x2b   :  { %836 = vmatmul.msk.f32.vlgmr.msra.gmra.mxu1 %vm167_vm3, %v1178_v24  ;;  %v1196_v32 = vsel %vm246_vm1, %v250_v27, %v251_v28  ;;  %v289_v60 = vmul.f32 32.0, %v879_v59  ;;  %vm293_vm4 = vweird.f32 %v879_v59  ;;  %146 = vmatpush.msra.mxu0 %v122_v2  ;;  %v121_v4 = vld [vmem:[%s1399_s19] sm:$0x3]  ;;  %v489_v18 = vld [vmem:[#allocation7 + $0x78] sm:$0xff]  ;;  %v391_v27 = vld [vmem:[#allocation7 + $0x10] sm:$0xff]  ;;  %s815_s19 = sshll.u32 %s1024_s25, 4  ;;  %s816_s19 = int_to_ptr.vmem [resolvable:$true] %s815_s19 }
  0x2c   :  { %v1199_v33 = vsel %vm160_vm2, %v164_v29, %v165_v30  ;;  %835 = vmatmul.msk.f32.vlgmr.msra.gmra.mxu0 %vm127_vm5, %v121_v4  ;;  %v356_v10 = vld [vmem:[%s1372_s9] sm:$0xff]  ;;  %472 = vmatpush.msrb.mxu2 %v459_v11  ;;  %v429_v28 = vld [vmem:[#allocation7 + $0x38] sm:$0xff]  ;;  %v457_v29 = vld [vmem:[#allocation7 + $0x48] sm:$0xff]  ;;  %s834_s9 = sld [smem:[#allocation2 + $0x1]] }
  0x2d   :  { %v290_v61 = vsub.f32 1.0, %v289_v60  ;;  %382 = vmatpush.msrb.mxu0 %v356_v10  ;;  %502 = vmatpush.msrb.mxu3 %v489_v18  ;;  %v488_v30 = vld [vmem:[#allocation7 + $0x70] sm:$0xff]  ;;  %v519_v10 = vld [vmem:[#allocation7 + $0x98] sm:$0xff]  ;;  %v524_v18 = vrot.slane %v1164_v19, 4 }
  0x2e   :  { %473 = vmatpush.msrb.mxu2 %v458_v23  ;;  %442 = vmatpush.msrb.mxu1 %v429_v28  ;;  %v525_v23 = vrot.slane %v1169_v20, 4 }
  0x2f   :  { %v291_v62 = vmul.f32 %v879_v59, %v290_v61  ;;  %409 = vmatpush.msra.mxu0 %v392_v17  ;;  %503 = vmatpush.msrb.mxu3 %v488_v30 }
  0x30   :  { %474 = vmatpush.msrb.mxu2 %v457_v29  ;;  %v871_v29 = vld [vmem:[%s1369_s6] ss:$0 sm:$0xff]  ;;  %s1401_s6 = sld [smem:[#allocation24_spill]] }
  0x31   :  { %v292_v63 = vadd.f32 %v879_v59, %v291_v62  ;;  %410 = vmatpush.msra.mxu0 %v391_v27  ;;  %v359_v62 = vlaneseq }
  0x32   :  { %839 = vmatmul.msk.f32.gmra.mxu2 %vm167_vm3, %v1193_v31  ;;  %841 = vmatmul.msk.f32.gmra.mxu3 %vm167_vm3, %v1196_v32 }
  0x33   :  { %837 = vmatmul.msk.f32.gmra.mxu1 %vm167_vm3, %v1199_v33  ;;  %v1223_v0 = vsel %vm293_vm4, %v879_v59, %v292_v63 }
  0xa8   :  { %v189_v35 = vpop.f32.mrf.mxu1 }
  0xa9   :  { %v198_v36 = vadd.f32 %v868_v34, %v189_v35  ;;  %v428_v35 = vld [vmem:[#allocation7 + $0x30] sm:$0xff] }
  0xaa   :  { %443 = vmatpush.msrb.mxu1 %v428_v35 }
  0xad   :  { %v233_v37 = vpop.f32.mrf.mxu2  ;;  %v274_v38 = vpop.f32.mrf.mxu3 }
  0xae   :  { %v239_v39 = vadd.f32 %v233_v37, %v198_v36  ;;  %v456_v37 = vld [vmem:[#allocation7 + $0x40] sm:$0xff] }
  0xaf   :  { %475 = vmatpush.msrb.mxu2 %v456_v37 }
  0xb0   :  { %v280_v41 = vadd.f32 %v274_v38, %v239_v39  ;;  %v192_v42 = vpop.f32.mrf.mxu1  ;;  %v487_v38 = vld [vmem:[#allocation7 + $0x68] sm:$0xff]  ;;  %v389_v39 = vld [vmem:[#allocation7] sm:$0xff]  ;;  %847 = vmatmul.msk.f32.vlgmr.msrb.gmra.mxu2 %vm167_vm3, %v1172_v21 }
  0xb1   :  { %v199_v44 = vadd.f32 %v868_v34, %v192_v42  ;;  %v390_v34 = vld [vmem:[#allocation7 + $0x8] sm:$0xff]  ;;  %504 = vmatpush.msrb.mxu3 %v487_v38 }
  0xb2   :  { %v282_v43 = vsel %vm167_vm3, %v280_v41, 0.0  ;;  %v314_v45 = vmul.f32 %v1213_v40, %v280_v41  ;;  %v297_v46 = vmul.f32 %v280_v41, %v280_v41  ;;  %411 = vmatpush.msra.mxu0 %v390_v34 }
  0xb3   :  { %283 = vadd.xlane.f32.xlu0 %v282_v43  ;;  %v427_v43 = vld [vmem:[#allocation7 + $0x28] sm:$0xff] }
  0xb4   :  { %v316_v47 = vsel %vm167_vm3, %v314_v45, 0.0  ;;  %v299_v48 = vsel %vm167_vm3, %v297_v46, 0.0  ;;  %412 = vmatpush.msra.mxu0 %v389_v39  ;;  %444 = vmatpush.msrb.mxu1 %v427_v43 }
  0xb5   :  { %v236_v49 = vpop.f32.mrf.mxu2  ;;  %317 = vadd.xlane.f32.xlu2 %v316_v47  ;;  %300 = vadd.xlane.f32.xlu1 %v299_v48  ;;  %v277_v50 = vpop.f32.mrf.mxu3  ;;  %v426_v48 = vld [vmem:[#allocation7 + $0x20] sm:$0xff] }
  0xb6   :  { %v240_v51 = vadd.f32 %v236_v49, %v199_v44  ;;  %v486_v44 = vld [vmem:[#allocation7 + $0x60] sm:$0xff]  ;;  %445 = vmatpush.msrb.mxu1 %v426_v48 }
  0xb7   :  { %505 = vmatpush.msrb.mxu3 %v486_v44  ;;  %845 = vmatmul.msk.f32.vlgmr.msrb.gmra.mxu1 %vm167_vm3, %v1178_v24 }
  0xb8   :  { %v281_v52 = vadd.f32 %v277_v50, %v240_v51  ;;  %849 = vmatmul.msk.f32.vlgmr.msrb.gmra.mxu3 %vm167_vm3, %v1175_v22  ;;  %v1253_v50 = vstv %s119_s8  ;;  %848 = vmatmul.msk.f32.gmra.mxu2 %vm167_vm3, %v1193_v31  ;;  %s817_s8 = sshll.u32 %s1384_s21, 4  ;;  %s818_s8 = int_to_ptr.hbm [resolvable:$true] %s817_s8 }
  0xba   :  { %v285_v53 = vsel %vm167_vm3, %v281_v52, 0.0  ;;  %v315_v54 = vmul.f32 %v1213_v40, %v281_v52  ;;  %v298_v55 = vmul.f32 %v281_v52, %v281_v52 }
  0xbb   :  { %286 = vadd.xlane.f32.xlu0 %v285_v53 }
  0xbc   :  { %v319_v56 = vsel %vm167_vm3, %v315_v54, 0.0  ;;  %v302_v57 = vsel %vm167_vm3, %v298_v55, 0.0 }
  0xbd   :  { %320 = vadd.xlane.f32.xlu2 %v319_v56  ;;  %303 = vadd.xlane.f32.xlu1 %v302_v57 }
  0xbf   :  { %846 = vmatmul.msk.f32.gmra.mxu1 %vm167_vm3, %v1199_v33 }
  0xc0   :  { %850 = vmatmul.msk.f32.gmra.mxu3 %vm167_vm3, %v1196_v32 }
 0x126   :  { %v284_v1 = vpop.xlane.xlu0 %283 }
 0x127   :  { %v1229_v3 = vmul.f32 %v1223_v0, %v284_v1  ;;  %v1267_v1 = vstv %s834_s9 }
 0x128   :  { %v301_v5 = vpop.xlane.xlu1 %300  ;;  %v318_v45 = vpop.xlane.xlu2 %317 }
 0x129   :  { %v307_v6 = vmul.f32 %v1229_v3, %v1229_v3  ;;  %v305_v7 = vmul.f32 %v301_v5, %v1223_v0  ;;  %v325_v21 = vmul.f32 %v1253_v50, %v1229_v3  ;;  %v322_v55 = vmul.f32 %v318_v45, %v1223_v0 }
 0x12a   :  { %v1270_v5 = vand.u32 127, %v359_v62 }
 0x12b   :  { %v309_v12 = vsub.f32 %v305_v7, %v307_v6  ;;  %v327_v58 = vsub.f32 %v322_v55, %v325_v21 }
 0x12d   :  { %v329_v13 = vadd.f32 1e-05, %v309_v12  ;;  %v518_v12 = vld [vmem:[#allocation7 + $0x90] sm:$0xff] }
 0x12e   :  { %v287_v14 = vpop.xlane.xlu0 %286 }
 0x12f   :  { %880 = vrsqrt.f32 %v329_v13  ;;  %v1242_v15 = vmul.f32 %v1223_v0, %v287_v14  ;;  %vm337_vm7 = vweird.f32 %v329_v13  ;;  %v516_v14 = vld [vmem:[#allocation7 + $0x80] sm:$0xff] }
 0x130   :  { %v304_v16 = vpop.xlane.xlu1 %303  ;;  %v321_v22 = vpop.xlane.xlu2 %320 }
 0x131   :  { %v308_v25 = vmul.f32 %v1242_v15, %v1242_v15  ;;  %v306_v26 = vmul.f32 %v304_v16, %v1223_v0  ;;  %v326_v59 = vmul.f32 %v1253_v50, %v1242_v15  ;;  %v323_v60 = vmul.f32 %v321_v22, %v1223_v0 }
 0x132   :  { %v521_v15 = vrot.slane %v1148_v8, 4  ;;  %v522_v16 = vrot.slane %v1153_v9, 4 }
 0x133   :  { %v310_v36 = vsub.f32 %v306_v26, %v308_v25  ;;  %v328_v32 = vsub.f32 %v323_v60, %v326_v59  ;;  %v526_v25 = vsel %vm520_vm13, %v524_v18, %v525_v23  ;;  %v148_v26 = vpop.f32.mrf.mxu0  ;;  %v477_v34 = vpop.f32.mrf.mxu2 }
 0x134   :  { %v523_v17 = vsel %vm520_vm13, %v521_v15, %v522_v16  ;;  %v447_v30 = vpop.f32.mrf.mxu1 }
 0x135   :  { %v881_v41 = vpop.eup %880  ;;  %v330_v42 = vadd.f32 1e-05, %v310_v36 }
 0x136   :  { %v332_v46 = vmul.f32 %v881_v41, %v329_v13  ;;  %vm338_vm6 = vweird.f32 %v881_v41  ;;  %v517_v13 = vld [vmem:[#allocation7 + $0x88] sm:$0xff] }
 0x137   :  { %882 = vrsqrt.f32 %v330_v42  ;;  %vm339_vm8 = vmor %vm337_vm7, %vm338_vm6  ;;  %vm347_vm10 = vweird.f32 %v330_v42  ;;  %vm650_vm6 = vcmask 91136  }
 0x138   :  { %v333_v47 = vmul.f32 %v881_v41, %v332_v46 }
 0x13a   :  { %v334_v49 = vmul.f32 0.5, %v333_v47 }
 0x13b   :  { %v507_v37 = vpop.f32.mrf.mxu3  ;;  %v480_v44 = vpop.f32.mrf.mxu2 }
 0x13c   :  { %v335_v51 = vsub.f32 1.5, %v334_v49 }
 0x13d   :  { %v883_v52 = vpop.eup %882 }
 0x13e   :  { %v336_v53 = vmul.f32 %v881_v41, %v335_v51  ;;  %v342_v54 = vmul.f32 %v883_v52, %v330_v42  ;;  %vm348_vm9 = vweird.f32 %v883_v52 }
 0x13f   :  { %vm349_vm11 = vmor %vm347_vm10, %vm348_vm9  ;;  %vm694_vm10 = vcmask 97280  }
 0x140   :  { %v343_v56 = vmul.f32 %v883_v52, %v342_v54  ;;  %v340_v24 = vsel %vm339_vm8, %v881_v41, %v336_v53  ;;  %v450_v41 = vpop.f32.mrf.mxu1 }
 0x141   :  { %v351_v31 = vmul.f32 %v340_v24, %v327_v58 }
 0x142   :  { %v344_v57 = vmul.f32 0.5, %v343_v56 }
 0x143   :  { %v354_v4 = vadd.f32 %v1267_v1, %v351_v31  ;;  %v510_v51 = vpop.f32.mrf.mxu3 }
 0x144   :  { %v345_v61 = vsub.f32 1.5, %v344_v57 }
 0x145   :  { %v361_v33 = vperm.slane %v354_v4, %v1270_v5 }
 0x146   :  { %v346_v63 = vmul.f32 %v883_v52, %v345_v61 }
 0x148   :  { %v350_v2 = vsel %vm349_vm11, %v883_v52, %v346_v63 }
 0x149   :  { %v352_v3 = vmul.f32 %v350_v2, %v328_v32  ;;  %v618_v32 = vld [vmem:[%s1373_s10] sm:$0xff] }
 0x14a   :  { %641 = vmatpush.msra.mxu1 %v618_v32 }
 0x14b   :  { %v355_v6 = vadd.f32 %v1267_v1, %v352_v3 }
 0x14d   :  { %v362_v7 = vperm.slane %v355_v6, %v1270_v5 }
 0x14f   :  { %v364_v11 = vsel %vm363_vm12, %v362_v7, %v361_v33 }
 0x150   :  { %842 = vmatmul.msk.f32.vlgmr.msrb.gmra.mxu0 %vm127_vm5, %v364_v11 }
 0x151   :  { %543 = vmatpush.msrb.mxu0 %v519_v10 }
 0x153   :  { %544 = vmatpush.msrb.mxu0 %v518_v12 }
 0x155   :  { %545 = vmatpush.msrb.mxu0 %v517_v13 }
 0x157   :  { %546 = vmatpush.msrb.mxu0 %v516_v14 }
 0x158   :  { %843 = vmatmul.msk.f32.vlgmr.msra.gmra.mxu0 %vm167_vm3, %v1148_v8  ;;  %v870_v8 = vld [vmem:[%s1374_s11] ss:$0 sm:$0xff]  ;;  %s806_s11 = sshll.u32 %s1401_s6, 4  ;;  %s807_s11 = int_to_ptr.hbm [resolvable:$true] %s806_s11 }
 0x159   :  { %v149_v27 = vadd.f32 %v870_v8, %v148_v26 }
 0x160   :  { %844 = vmatmul.msk.f32.gmra.mxu0 %vm167_vm3, %v1164_v19 }
 0x168   :  { %851 = vmatmul.msk.f32.vlgmr.msrb.gmra.mxu0 %vm167_vm3, %v523_v17 }
 0x170   :  { %852 = vmatmul.msk.f32.gmra.mxu0 %vm167_vm3, %v526_v25 }
 0x1cd   :  { %v384_v9 = vpop.f32.mrf.mxu0 }
 0x1ce   :  { %v1292_v28 = vadd.f32 %v384_v9, %v149_v27 }
 0x1d5   :  { %v414_v19 = vpop.f32.mrf.mxu0 }
 0x1d6   :  { %v423_v20 = vadd.f32 %v871_v29, %v414_v19 }
 0x1d8   :  { %v453_v35 = vadd.f32 %v447_v30, %v423_v20 }
 0x1da   :  { %v483_v38 = vadd.f32 %v477_v34, %v453_v35 }
 0x1dc   :  { %v513_v42 = vadd.f32 %v507_v37, %v483_v38 }
 0x1dd   :  { %v417_v36 = vpop.f32.mrf.mxu0 }
 0x1de   :  { %v424_v39 = vadd.f32 %v871_v29, %v417_v36 }
 0x1e0   :  { %v454_v43 = vadd.f32 %v450_v41, %v424_v39 }
 0x1e2   :  { %v484_v47 = vadd.f32 %v480_v44, %v454_v43 }
 0x1e4   :  { %v514_v53 = vadd.f32 %v510_v51, %v484_v47 }
 0x1e5   :  { %v548_v45 = vpop.f32.mrf.mxu0 }
 0x1e6   :  { %v554_v46 = vadd.f32 %v548_v45, %v513_v42 }
 0x1e8   :  { %v556_v48 = vsel %vm167_vm3, %v554_v46, 0.0  ;;  %v564_v49 = vmul.f32 %v554_v46, %v554_v46  ;;  %v578_v58 = vmul.f32 %v1213_v40, %v554_v46 }
 0x1e9   :  { %557 = vadd.xlane.f32.xlu0 %v556_v48 }
 0x1ea   :  { %v566_v52 = vsel %vm167_vm3, %v564_v49, 0.0  ;;  %v580_v59 = vsel %vm167_vm3, %v578_v58, 0.0  ;;  %v1022_v49 = vmov 12.0  }
 0x1eb   :  { %567 = vadd.xlane.f32.xlu2 %v566_v52 }
 0x1ed   :  { %v551_v54 = vpop.f32.mrf.mxu0 }
 0x1ee   :  { %v555_v21 = vadd.f32 %v551_v54, %v514_v53 }
 0x1f0   :  { %v559_v55 = vsel %vm167_vm3, %v555_v21, 0.0  ;;  %v579_v22 = vmul.f32 %v1213_v40, %v555_v21  ;;  %v565_v56 = vmul.f32 %v555_v21, %v555_v21 }
 0x1f1   :  { %560 = vadd.xlane.f32.xlu1 %v559_v55 }
 0x1f2   :  { %v583_v24 = vsel %vm167_vm3, %v579_v22, 0.0  ;;  %v569_v57 = vsel %vm167_vm3, %v565_v56, 0.0 }
 0x1f3   :  { %584 = vadd.xlane.f32.xlu2 %v583_v24  ;;  %570 = vadd.xlane.f32.xlu0 %v569_v57  ;;  %v689_v24 = vld [vmem:[%s1377_s14 + $0x8] sm:$0xf]  ;;  %v688_v57 = vld [vmem:[%s1377_s14] sm:$0xff] }
 0x1f4   :  { %854 = vmatpush.msk.msra.mxu2 %vm520_vm13, %v689_v24 }
 0x1f6   :  { %716 = vmatpush.msra.mxu2 %v688_v57 }
 0x1f9   :  { %581 = vadd.xlane.f32.xlu1 %v580_v59 }
 0x25c   :  { %v558_v60 = vpop.xlane.xlu0 %557 }
 0x25d   :  { %v562_v61 = vmul.f32 %v558_v60, %v1223_v0 }
 0x25e   :  { %v568_v31 = vpop.xlane.xlu2 %567 }
 0x25f   :  { %v574_v62 = vmul.f32 %v562_v61, %v562_v61  ;;  %v572_v63 = vmul.f32 %v568_v31, %v1223_v0  ;;  %v588_v9 = vmul.f32 %v562_v61, %v1253_v50 }
 0x261   :  { %v576_v2 = vsub.f32 %v572_v63, %v574_v62 }
 0x263   :  { %v592_v3 = vadd.f32 1e-05, %v576_v2 }
 0x264   :  { %v561_v4 = vpop.xlane.xlu1 %560 }
 0x265   :  { %884 = vrsqrt.f32 %v592_v3  ;;  %v563_v40 = vmul.f32 %v561_v4, %v1223_v0  ;;  %vm600_vm15 = vweird.f32 %v592_v3 }
 0x266   :  { %v571_v6 = vpop.xlane.xlu0 %570  ;;  %v585_v8 = vpop.xlane.xlu2 %584 }
 0x267   :  { %v575_v33 = vmul.f32 %v563_v40, %v563_v40  ;;  %v573_v7 = vmul.f32 %v571_v6, %v1223_v0  ;;  %v589_v30 = vmul.f32 %v563_v40, %v1253_v50  ;;  %v587_v20 = vmul.f32 %v585_v8, %v1223_v0  ;;  %v873_v6 = vld [vmem:[%s1376_s13] ss:$0 sm:$0xff] }
 0x269   :  { %v577_v10 = vsub.f32 %v573_v7, %v575_v33  ;;  %v591_v38 = vsub.f32 %v587_v20, %v589_v30  ;;  %v764_v20 = vld [vmem:[%s1381_s18] sm:$0x3f] }
 0x26a   :  { %856 = vmatpush.msk.msra.mxu3 %vm205_vm0, %v764_v20  ;;  %vm769_vm0 = vcmask 48128  }
 0x26b   :  { %v885_v11 = vpop.eup %884  ;;  %v593_v12 = vadd.f32 1e-05, %v577_v10  ;;  %v874_v10 = vld [vmem:[%s1378_s15] ss:$0 sm:$0xff] }
 0x26c   :  { %v595_v13 = vmul.f32 %v885_v11, %v592_v3  ;;  %v582_v17 = vpop.xlane.xlu1 %581  ;;  %vm601_vm14 = vweird.f32 %v885_v11  ;;  %v872_v3 = vld [vmem:[%s1375_s12] ss:$0 sm:$0xff] }
 0x26d   :  { %886 = vrsqrt.f32 %v593_v12  ;;  %v586_v26 = vmul.f32 %v582_v17, %v1223_v0  ;;  %vm602_vm1 = vmor %vm600_vm15, %vm601_vm14  ;;  %vm610_vm3 = vweird.f32 %v593_v12 }
 0x26e   :  { %v596_v14 = vmul.f32 %v885_v11, %v595_v13 }
 0x26f   :  { %v590_v34 = vsub.f32 %v586_v26, %v588_v9 }
 0x270   :  { %v597_v15 = vmul.f32 0.5, %v596_v14 }
 0x272   :  { %v598_v16 = vsub.f32 1.5, %v597_v15 }
 0x273   :  { %v887_v18 = vpop.eup %886 }
 0x274   :  { %v605_v23 = vmul.f32 %v887_v18, %v593_v12  ;;  %v599_v25 = vmul.f32 %v885_v11, %v598_v16  ;;  %vm611_vm2 = vweird.f32 %v887_v18  ;;  %v1023_v16 = vmov 6.0  }
 0x275   :  { %vm612_vm4 = vmor %vm610_vm3, %vm611_vm2  ;;  %vm796_vm2 = vcmask 17408  }
 0x276   :  { %v606_v27 = vmul.f32 %v887_v18, %v605_v23  ;;  %v603_v19 = vsel %vm602_vm1, %v885_v11, %v599_v25 }
 0x277   :  { %v614_v36 = vmul.f32 %v603_v19, %v590_v34 }
 0x278   :  { %v607_v29 = vmul.f32 0.5, %v606_v27 }
 0x279   :  { %v616_v42 = vadd.f32 %v614_v36, %v1267_v1 }
 0x27a   :  { %v608_v35 = vsub.f32 1.5, %v607_v29 }
 0x27b   :  { %v621_v44 = vperm.slane %v616_v42, %v1270_v5 }
 0x27c   :  { %v609_v37 = vmul.f32 %v887_v18, %v608_v35 }
 0x27e   :  { %v613_v39 = vsel %vm612_vm4, %v887_v18, %v609_v37 }
 0x27f   :  { %v615_v41 = vmul.f32 %v613_v39, %v591_v38 }
 0x281   :  { %v617_v43 = vadd.f32 %v615_v41, %v1267_v1 }
 0x283   :  { %v622_v50 = vperm.slane %v617_v43, %v1270_v5 }
 0x285   :  { %v623_v0 = vsel %vm363_vm12, %v622_v50, %v621_v44  ;;  %vm726_vm12 = vcmask 41984   ;;  %v875_v44 = vld [vmem:[%s1379_s16] ss:$0 sm:$0xff] }
 0x286   :  { %853 = vmatmul.msk.f32.vlgmr.msra.gmra.mxu1 %vm127_vm5, %v623_v0 }
 0x303   :  { %v643_v45 = vpop.f32.mrf.mxu1 }
 0x304   :  { %v646_v46 = vadd.f32 %v643_v45, %v1292_v28  ;;  %v876_v45 = vld [vmem:[%s1380_s17] ss:$0 sm:$0xff]  ;;  %s1025_s17 = smov [#allocation9]  }
 0x305   :  { %s804_s3 = sshll.u32 %s1025_s17, 4  ;;  %s805_s3 = int_to_ptr.vmem [resolvable:$true] %s804_s3 }
 0x306   :  { %888 = vtanh.f32 %v646_v46 }
 0x307   :  { %890 = vrcp.f32 %v1022_v49 }
 0x30c   :  { %v889_v47 = vpop.eup %888 }
 0x30d   :  { %v651_v48 = vsel %vm650_vm6, %v889_v47, 0.0  ;;  %v891_v1 = vpop.eup %890 }
 0x30e   :  { %652 = vadd.xlane.f32.xlu0 %v651_v48  ;;  %v655_v51 = vmul.f32 12.0, %v891_v1  ;;  %vm659_vm7 = vweird.f32 %v891_v1  ;;  %v877_v48 = vld [vmem:[%s1400_s27] ss:$0 sm:$0xff] }
 0x310   :  { %v656_v52 = vsub.f32 1.0, %v655_v51 }
 0x312   :  { %v657_v53 = vmul.f32 %v891_v1, %v656_v52 }
 0x314   :  { %v658_v5 = vadd.f32 %v891_v1, %v657_v53 }
 0x316   :  { %v660_v54 = vsel %vm659_vm7, %v891_v1, %v658_v5 }
 0x381   :  { %v653_v21 = vpop.xlane.xlu0 %652 }
 0x382   :  { %v661_v55 = vmul.f32 %v660_v54, %v653_v21 }
 0x384   :  { %v662_v22 = vsub.f32 %v889_v47, %v661_v55 }
 0x386   :  { %v663_v56 = vmul.f32 %v662_v22, %v662_v22 }
 0x388   :  { %v664_v28 = vsel %vm650_vm6, %v663_v56, 0.0 }
 0x389   :  { %665 = vadd.xlane.f32.xlu1 %v664_v28 }
 0x3fc   :  { %v666_v58 = vpop.xlane.xlu1 %665 }
 0x3fd   :  { %v667_v59 = vmul.f32 %v666_v58, %v660_v54 }
 0x3ff   :  { %v668_v60 = vadd.f32 1e-05, %v667_v59 }
 0x401   :  { %892 = vrsqrt.f32 %v668_v60  ;;  %vm675_vm8 = vweird.f32 %v668_v60 }
 0x402   :  { %894 = vrcp.f32 %v1023_v16 }
 0x407   :  { %v893_v61 = vpop.eup %892 }
 0x408   :  { %v670_v31 = vmul.f32 %v893_v61, %v668_v60  ;;  %vm676_vm5 = vweird.f32 %v893_v61  ;;  %v895_v17 = vpop.eup %894 }
 0x409   :  { %vm677_vm9 = vmor %vm675_vm8, %vm676_vm5  ;;  %v731_v18 = vmul.f32 6.0, %v895_v17  ;;  %vm735_vm13 = vweird.f32 %v895_v17 }
 0x40a   :  { %v671_v62 = vmul.f32 %v893_v61, %v670_v31 }
 0x40b   :  { %v732_v23 = vsub.f32 1.0, %v731_v18 }
 0x40c   :  { %v672_v63 = vmul.f32 0.5, %v671_v62 }
 0x40d   :  { %v733_v25 = vmul.f32 %v895_v17, %v732_v23 }
 0x40e   :  { %v673_v32 = vsub.f32 1.5, %v672_v63 }
 0x40f   :  { %v734_v26 = vadd.f32 %v895_v17, %v733_v25 }
 0x410   :  { %v674_v2 = vmul.f32 %v893_v61, %v673_v32 }
 0x411   :  { %v736_v8 = vsel %vm735_vm13, %v895_v17, %v734_v26 }
 0x412   :  { %v678_v4 = vsel %vm677_vm9, %v893_v61, %v674_v2 }
 0x413   :  { %v679_v40 = vmul.f32 %v678_v4, %v662_v22 }
 0x415   :  { %v683_v33 = vmul.f32 %v872_v3, %v679_v40 }
 0x417   :  { %v687_v7 = vadd.f32 %v873_v6, %v683_v33 }
 0x419   :  { %855 = vmatmul.msk.f32.vlgmr.msra.gmra.mxu2 %vm694_vm10, %v687_v7 }
 0x49c   :  { %v718_v11 = vpop.f32.mrf.mxu2 }
 0x49d   :  { %v719_v12 = vadd.f32 %v874_v10, %v718_v11 }
 0x49f   :  { %v722_v13 = vmul.f32 0.2, %v719_v12  ;;  %vm721_vm11 = vcmp.ge.f32.partialorder %v719_v12, 0.0 }
 0x4a1   :  { %v723_v14 = vsel %vm721_vm11, %v719_v12, %v722_v13 }
 0x4a2   :  { %v727_v15 = vsel %vm726_vm12, %v723_v14, 0.0 }
 0x4a3   :  { %728 = vadd.xlane.f32.xlu2 %v727_v15 }
 0x516   :  { %v729_v27 = vpop.xlane.xlu2 %728 }
 0x517   :  { %v737_v9 = vmul.f32 %v736_v8, %v729_v27 }
 0x519   :  { %v738_v29 = vsub.f32 %v723_v14, %v737_v9 }
 0x51b   :  { %v739_v19 = vmul.f32 %v738_v29, %v738_v29 }
 0x51d   :  { %v740_v30 = vsel %vm726_vm12, %v739_v19, 0.0 }
 0x51e   :  { %741 = vadd.xlane.f32.xlu0 %v740_v30 }
 0x591   :  { %v742_v34 = vpop.xlane.xlu0 %741 }
 0x592   :  { %v743_v35 = vmul.f32 %v742_v34, %v736_v8 }
 0x594   :  { %v744_v36 = vadd.f32 1e-05, %v743_v35 }
 0x596   :  { %896 = vrsqrt.f32 %v744_v36  ;;  %vm751_vm15 = vweird.f32 %v744_v36 }
 0x59c   :  { %v897_v37 = vpop.eup %896 }
 0x59d   :  { %v746_v38 = vmul.f32 %v897_v37, %v744_v36  ;;  %vm752_vm14 = vweird.f32 %v897_v37 }
 0x59e   :  { %vm753_vm1 = vmor %vm751_vm15, %vm752_vm14 }
 0x59f   :  { %v747_v39 = vmul.f32 %v897_v37, %v746_v38 }
 0x5a1   :  { %v748_v41 = vmul.f32 0.5, %v747_v39 }
 0x5a3   :  { %v749_v42 = vsub.f32 1.5, %v748_v41 }
 0x5a5   :  { %v750_v43 = vmul.f32 %v897_v37, %v749_v42 }
 0x5a7   :  { %v754_v50 = vsel %vm753_vm1, %v897_v37, %v750_v43 }
 0x5a8   :  { %v755_v0 = vmul.f32 %v754_v50, %v738_v29 }
 0x5aa   :  { %v759_v46 = vmul.f32 %v875_v44, %v755_v0 }
 0x5ac   :  { %v763_v47 = vadd.f32 %v876_v45, %v759_v46 }
 0x5ae   :  { %857 = vmatmul.msk.f32.vlgmr.msra.gmra.mxu3 %vm769_vm0, %v763_v47  ;;  %798 = vst.msk [vmem:[#allocation10] sm:$0x3] %vm726_vm12, %v763_v47 }
 0x5af   :  { %820 = dma.vmem_to_hbm [thread:$0]  %s816_s19, 32, %s818_s8, [#allocation11]  }
 0x631   :  { %v793_v49 = vpop.f32.mrf.mxu3 }
 0x632   :  { %v794_v1 = vadd.f32 %v877_v48, %v793_v49 }
 0x634   :  { %797 = vst.msk [vmem:[#allocation9] sm:$0x3] %vm796_vm2, %v794_v1 }
 0x635   :  { %809 = dma.vmem_to_hbm [thread:$0]  %s805_s3, 32, %s807_s11, [#allocation4]  }
 0x636   :  { %1012 = dma.done.wait [#allocation4], 32  }
 0x637   :  { %1013 = vsyncadd [#allocation4], 4294967264 }
 0x638   :  { %1014 = dma.done.wait [#allocation11], 32  }
 0x639   :  { %1015 = vsyncadd [#allocation11], 4294967264 }
 0x63a   :  { %829 = vsyncpa [#allocation3], 1 }
 0x63b   :  { %830 = vsyncpa [#allocation8], 1 }
 0x63c   :  { %831 = vsyncpa [#allocation4], 1 }
 0x63d   :  { %832 = vsyncpa [#allocation11], 1 }
 0x63e   :  { %833 = vsyncpa [#allocation5], 1 }

</bundles_post_ra>
